<compile_context>
chip_gen: v6e
topology: v6e:2x2x1
jax: 0.10.0
libtpu: 0.0.40
codegen_flags: <defaults>
</compile_context>

<pallas_src>
import functools

import jax
import jax.numpy as jnp
from jax.experimental import pallas as pl
from jax.experimental.pallas import tpu as pltpu


def _mce_kernel(logits_ref, tgt_ref, dep_ref, thr_ref, out_ref, acc_ref, *,
                ignore_index: int, hw: int, tile_hw: int, mask_tail: bool):
    """Grid = (n_split, N, n_hw_inner).

    acc_ref (1, tile_hw) f32 is the lane-wise running sum of loss*weight for the current
    output row: zeroed at the first spatial tile, reduced + flushed to out_ref (one
    lane-dense 128-wide row per (split, image)) at the last spatial tile.
    """
    j = pl.program_id(2)

    @pl.when(j == 0)
    def _():
        acc_ref[...] = jnp.zeros_like(acc_ref)

    logits = logits_ref[0]                          # (C, tile_hw), native dtype (f32/bf16)
    tgt = tgt_ref[0]                                # (1, tile_hw) int32
    depth = dep_ref[0].astype(jnp.float32)          # (1, tile_hw)
    thr = thr_ref[0, 0]                             # scalar depth mean (SMEM, f32)

    C = logits.shape[0]

    # Class-axis max on the XLU, in the native dtype (exact: max returns an input value;
    # bf16 halves XLU traffic).  Upcast only for exp / LSE.
    m = jnp.max(logits, axis=0, keepdims=True)                        # (1, tile_hw)
    logits32 = logits.astype(jnp.float32)
    m32 = m.astype(jnp.float32)
    e = jnp.exp(logits32 - m32)                                       # (C, tile_hw) f32, EUP

    # Class-axis sum(exp) on the otherwise-idle MXU (ones-vector matmul) instead of the XLU.
    ones32 = jnp.ones((1, C), jnp.float32)
    sum_e = jnp.dot(ones32, e, preferred_element_type=jnp.float32,
                    precision=jax.lax.Precision.HIGHEST)              # (1, tile_hw)
    lse = m32 + jnp.log(sum_e)

    # Logit at the target class via one-hot select + ones-matmul on the MXU
    # (exact: exactly one nonzero per lane column, multiplied by 1.0).
    cls_iota = jax.lax.broadcasted_iota(jnp.int32, logits.shape, 0)   # (C, tile_hw)
    sel = jnp.where(cls_iota == tgt, logits, jnp.zeros((), logits.dtype))
    ones_nat = jnp.ones((1, C), logits.dtype)
    nat_prec = jax.lax.Precision.HIGHEST if logits.dtype == jnp.float32 else None
    tgt_logit = jnp.dot(ones_nat, sel, preferred_element_type=jnp.float32,
                        precision=nat_prec)                           # (1, tile_hw)

    nll = lse - tgt_logit                            # per-position cross entropy

    # ignore_index pixels -> 0 loss.  Ragged / phantom spatial tails -> 0 loss.  Only emitted
    # when the tiling actually has a tail; select-based so garbage/NaN in tail lanes never
    # propagates into valid lanes.
    valid = tgt != ignore_index
    if mask_tail:
        tile_idx = pl.program_id(0) * pl.num_programs(2) + j          # logical spatial tile
        pos = tile_idx * tile_hw + jax.lax.broadcasted_iota(jnp.int32, tgt.shape, 1)
        valid = valid & (pos < hw)
    loss = jnp.where(valid, nll, 0.0)

    w = jnp.where(depth > thr, 10.0, 1.0)            # depth-based weights
    acc_ref[...] += loss * w                         # lane-wise; no per-step cross-lane reduce

    @pl.when(j == pl.num_programs(2) - 1)
    def _():
        s = jnp.sum(acc_ref[...])                    # one cross-lane reduce per output row
        out_ref[...] = jnp.full(out_ref.shape, s, dtype=jnp.float32)


def masked_cross_entropy(prediction, target, depth, *, ignore_index=255, tile_hw=None):
    """prediction: (N, C, H, W) float logits (f32 or bf16); target: (N, H, W) int;
    depth: (N, 1, H, W) float (any float dtype)."""
    N, C, H, W = prediction.shape
    HW = H * W
    P = N * HW

    # Lane-dense layout: NCHW -> (N, C, HW) is a pure reshape.  target/depth keep their
    # incoming dtypes (no f32 materialization -> no extra HBM round trip).
    logits = prediction.reshape(N, C, HW)
    tgt = target.reshape(N, 1, HW).astype(jnp.int32)
    dep = depth.reshape(N, 1, HW)
    thr = jnp.mean(depth).astype(jnp.float32).reshape(1, 1)   # depth.mean() in depth's dtype

    lsize = jnp.dtype(prediction.dtype).itemsize
    dsize = jnp.dtype(depth.dtype).itemsize
    c_pad = -(-C // 8) * 8                                    # sublane-padded class count

    # Generation-aware VMEM budget: keep all live tiles + fused f32 temporaries within
    # ~28 MiB so v7x (64 MiB physical) never OOMs, while still reaching the >=512-lane
    # regime (~85% of HBM roofline) on v5e/v6e.  Raise the scoped limit to match.
    try:
        phys_vmem = int(pltpu.get_tpu_info().vmem_capacity_bytes)
    except Exception:
        phys_vmem = 64 << 20                                  # conservative (v7x physical)
    tile_budget = min(28 << 20, max(8 << 20, phys_vmem // 2 - (4 << 20)))
    vmem_limit = int(min(max(phys_vmem - (8 << 20), 32 << 20), 48 << 20))

    # Per-lane VMEM cost: double-buffered input tiles (real dtypes, sublane-padded C)
    # + in-kernel f32 temporaries (upcast logits, exp, one-hot select) + accumulator/misc.
    bytes_per_lane = (2 * (c_pad * lsize + 4 + dsize)
                      + 2 * c_pad * 4 + c_pad * lsize
                      + 64)
    max_tile = max(128, (tile_budget // bytes_per_lane) // 128 * 128)
    tile_hw = max_tile if tile_hw is None else min(tile_hw, max_tile)
    if tile_hw >= HW:
        tile_hw = HW                                  # single tile (any HW == full dim)
    else:
        tile_hw = max(128, (tile_hw // 128) * 128)    # lane-aligned; tail masked in kernel
    n_hw = pl.cdiv(HW, tile_hw)

    # v7x core split: with 2 TensorCores, an odd batch (esp. N==1) leaves a core idle under
    # batch-only parallelism -> split spatial tiles across a second "parallel" grid axis.
    # No-op on single-TC v5e/v6e and for even N.
    n_split = 2 if (N % 2 == 1 and n_hw >= 2) else 1
    n_hw_inner = pl.cdiv(n_hw, n_split)
    mask_tail = (HW % tile_hw != 0) or (n_split * n_hw_inner != n_hw)

    def data_idx(s, n, j):
        t = s * n_hw_inner + j
        if n_split * n_hw_inner != n_hw:              # phantom tiles: clamp the block index
            t = jnp.minimum(t, n_hw - 1)              # (their contribution is pos-masked)
        return (n, 0, t)

    def out_idx(s, n, j):
        return (n * n_split + s, 0, 0)

    kernel = functools.partial(_mce_kernel, ignore_index=ignore_index,
                               hw=HW, tile_hw=tile_hw, mask_tail=mask_tail)

    cost = pl.CostEstimate(
        flops=10 * P * C,
        transcendentals=P * (C + 1),
        bytes_accessed=P * C * lsize + P * 4 + P * dsize + N * n_split * 128 * 4,
    )

    out = pl.pallas_call(
        kernel,
        out_shape=jax.ShapeDtypeStruct((N * n_split, 1, 128), jnp.float32),
        grid=(n_split, N, n_hw_inner),
        in_specs=[
            pl.BlockSpec((1, C, tile_hw), data_idx),                 # logits tile (native dtype)
            pl.BlockSpec((1, 1, tile_hw), data_idx),                 # target tile (int32)
            pl.BlockSpec((1, 1, tile_hw), data_idx),                 # depth tile (native dtype)
            pl.BlockSpec(memory_space=pltpu.MemorySpace.SMEM),       # depth-mean scalar
        ],
        out_specs=pl.BlockSpec((1, 1, 128), out_idx),                # lane-dense partial sums
        scratch_shapes=[pltpu.VMEM((1, tile_hw), jnp.float32)],      # lane-wise accumulator
        compiler_params=pltpu.CompilerParams(
            dimension_semantics=("parallel", "parallel", "arbitrary"),
            vmem_limit_bytes=vmem_limit),
        cost_estimate=cost,
    )(logits, tgt, dep, thr)

    # Final combine: mean over ALL pixels (matches torch.mean(loss * weights); ignore_index
    # pixels contribute 0 to the numerator but still count in the denominator).
    return jnp.sum(out[:, 0, 0]) / float(P)


def _reference(prediction, target, depth, ignore_index):
    """Pure-JAX reference matching the PyTorch module."""
    logits = jnp.transpose(prediction, (0, 2, 3, 1)).astype(jnp.float32)   # (N,H,W,C)
    logp = jax.nn.log_softmax(logits, axis=-1)
    valid = target != ignore_index
    tgt_safe = jnp.where(valid, target, 0)
    nll = -jnp.take_along_axis(logp, tgt_safe[..., None].astype(jnp.int32), axis=-1)[..., 0]
    loss = jnp.where(valid, nll, 0.0)                                      # (N,H,W)
    d = depth.astype(jnp.float32)
    w = jnp.where(d > d.mean(), 10.0, 1.0).squeeze()                       # (N,H,W)
    return jnp.mean(loss * w)


def _make_case(key, N, C, H, W, ignore, logits_dtype=jnp.float32):
    k1, k2, k3, k4 = jax.random.split(key, 4)
    prediction = jax.random.normal(k1, (N, C, H, W), dtype=jnp.float32).astype(logits_dtype)
    target = jax.random.randint(k2, (N, H, W), 0, C).astype(jnp.int32)
    ignore_mask = jax.random.uniform(k3, (N, H, W)) < 0.1
    target = jnp.where(ignore_mask, ignore, target)
    depth = jax.random.uniform(k4, (N, 1, H, W), dtype=jnp.float32) * 5.0
    return prediction, target, depth


if __name__ == "__main__":
    IGNORE = 255
    keys = jax.random.split(jax.random.PRNGKey(0), 4)

    # (N, C, H, W, logits dtype, forced tile_hw, tolerance)
    cases = [
        (2, 4, 16, 16, jnp.float32, None, 1e-5),   # single-tile, batch-parallel path
        (2, 4, 16, 32, jnp.float32, 128,  1e-5),   # multi-tile accumulation, exact tiling
        (1, 5, 12, 20, jnp.float32, 128,  1e-5),   # spatial core-split + ragged 112-lane tail
        (1, 4, 16, 20, jnp.bfloat16, 128, 2e-4),   # bf16 logits + phantom (clamped) tile
    ]
    for i, ((N, C, H, W, dt, thw, tol), k) in enumerate(zip(cases, keys)):
        prediction, target, depth = _make_case(k, N, C, H, W, IGNORE, dt)
        out = masked_cross_entropy(prediction, target, depth,
                                   ignore_index=IGNORE, tile_hw=thw)
        out = jax.block_until_ready(out)
        ref = jax.block_until_ready(_reference(prediction, target, depth, IGNORE))
        assert jnp.allclose(out, ref, rtol=tol, atol=tol), (i, out, ref)

    print("KERNEL_OK")
</pallas_src>

<mosaic_0001>
module attributes {stable_mosaic.version = 11 : i64} {
  func.func @_mce_kernel(%arg0: i32, %arg1: i32, %arg2: i32, %arg3: memref<1x4x256xf32, #tpu.memory_space<vmem>>, %arg4: memref<1x1x256xi32, #tpu.memory_space<vmem>>, %arg5: memref<1x1x256xf32, #tpu.memory_space<vmem>>, %arg6: memref<1x1xf32, #tpu.memory_space<smem>>, %arg7: memref<1x1x128xf32, #tpu.memory_space<vmem>>, %arg8: memref<1x256xf32, #tpu.memory_space<vmem>>) attributes {dimension_semantics = [#tpu.dimension_semantics<parallel>, #tpu.dimension_semantics<parallel>, #tpu.dimension_semantics<arbitrary>], iteration_bounds = array<i64: 1, 2, 1>, scalar_prefetch = 0 : i64, scratch_operands = 1 : i64, tpu.core_type = #tpu.core_type<tc>, window_params = [{transform_indices = @transform_0, window_bounds = array<i64: 1, 4, 256>}, {transform_indices = @transform_1, window_bounds = array<i64: 1, 1, 256>}, {transform_indices = @transform_2, window_bounds = array<i64: 1, 1, 256>}, {transform_indices = @transform_3, window_bounds = array<i64: 1, 1>}, {transform_indices = @transform_4, window_bounds = array<i64: 1, 1, 128>}]} {
    %c0_i32 = arith.constant 0 : i32
    %0 = arith.cmpi eq, %arg2, %c0_i32 : i32
    %1 = arith.extui %0 : i1 to i32
    %c0_i32_0 = arith.constant 0 : i32
    %2 = arith.cmpi ne, %1, %c0_i32_0 : i32
    scf.if %2 {
      %cst_25 = arith.constant 0.000000e+00 : f32
      %43 = vector.broadcast %cst_25 : f32 to vector<1x256xf32>
      %c0_26 = arith.constant 0 : index
      %c0_27 = arith.constant 0 : index
      %44 = vector.load %arg8[%c0_26, %c0_27] : memref<1x256xf32, #tpu.memory_space<vmem>>, vector<1x256xf32>
      tpu.vector_store %arg8[%c0_26, %c0_27], %43 {strides = array<i32>} : memref<1x256xf32, #tpu.memory_space<vmem>>, vector<1x256xf32>,
    } else {
    }
    %c0 = arith.constant 0 : index
    %c0_1 = arith.constant 0 : index
    %c0_2 = arith.constant 0 : index
    %3 = vector.load %arg3[%c0, %c0_1, %c0_2] : memref<1x4x256xf32, #tpu.memory_space<vmem>>, vector<1x4x256xf32>
    %4 = vector.shape_cast %3 : vector<1x4x256xf32> to vector<4x256xf32>
    %c0_3 = arith.constant 0 : index
    %c0_4 = arith.constant 0 : index
    %c0_5 = arith.constant 0 : index
    %5 = vector.load %arg4[%c0_3, %c0_4, %c0_5] : memref<1x1x256xi32, #tpu.memory_space<vmem>>, vector<1x1x256xi32>
    %6 = vector.shape_cast %5 : vector<1x1x256xi32> to vector<1x256xi32>
    %c0_6 = arith.constant 0 : index
    %c0_7 = arith.constant 0 : index
    %c0_8 = arith.constant 0 : index
    %7 = vector.load %arg5[%c0_6, %c0_7, %c0_8] : memref<1x1x256xf32, #tpu.memory_space<vmem>>, vector<1x1x256xf32>
    %8 = vector.shape_cast %7 : vector<1x1x256xf32> to vector<1x256xf32>
    %c0_9 = arith.constant 0 : index
    %c0_10 = arith.constant 0 : index
    %9 = memref.load %arg6[%c0_9, %c0_10] : memref<1x1xf32, #tpu.memory_space<smem>>
    %cst = arith.constant dense<0xFF800000> : vector<256xf32>
    %10 = vector.multi_reduction <maximumf>, %4, %cst [0] : vector<4x256xf32> to vector<256xf32>
    %11 = vector.shape_cast %10 : vector<256xf32> to vector<1x256xf32>
    %12 = vector.broadcast %11 : vector<1x256xf32> to vector<4x256xf32>
    %13 = arith.subf %4, %12 : vector<4x256xf32>
    %14 = math.exp %13 : vector<4x256xf32>
    %cst_11 = arith.constant 1.000000e+00 : f32
    %15 = vector.broadcast %cst_11 : f32 to vector<1x4xf32>
    %cst_12 = arith.constant dense<0.000000e+00> : vector<1x256xf32>
    %16 = tpu.matmul %15, %14, %cst_12 {dimension_numbers = #tpu.dot_dimension_numbers<[1], [0], [0], [1], [0, 0, 1, 1], [], []>, precision = #tpu.contract_precision<fp32>} : vector<1x4xf32>, vector<4x256xf32>, vector<1x256xf32> -> vector<1x256xf32>
    %17 = math.log %16 : vector<1x256xf32>
    %18 = arith.addf %11, %17 : vector<1x256xf32>
    %19 = tpu.iota {dimensions = array<i32: 0>} : vector<4x256xi32>
    %20 = vector.broadcast %6 : vector<1x256xi32> to vector<4x256xi32>
    %21 = arith.cmpi eq, %19, %20 : vector<4x256xi32>
    %cst_13 = arith.constant 0.000000e+00 : f32
    %22 = vector.broadcast %cst_13 : f32 to vector<4x256xf32>
    %23 = arith.select %21, %4, %22 : vector<4x256xi1>, vector<4x256xf32>
    %cst_14 = arith.constant 1.000000e+00 : f32
    %24 = vector.broadcast %cst_14 : f32 to vector<1x4xf32>
    %cst_15 = arith.constant dense<0.000000e+00> : vector<1x256xf32>
    %25 = tpu.matmul %24, %23, %cst_15 {dimension_numbers = #tpu.dot_dimension_numbers<[1], [0], [0], [1], [0, 0, 1, 1], [], []>, precision = #tpu.contract_precision<fp32>} : vector<1x4xf32>, vector<4x256xf32>, vector<1x256xf32> -> vector<1x256xf32>
    %26 = arith.subf %18, %25 : vector<1x256xf32>
    %c255_i32 = arith.constant 255 : i32
    %27 = vector.broadcast %c255_i32 : i32 to vector<1x256xi32>
    %28 = arith.cmpi ne, %6, %27 : vector<1x256xi32>
    %cst_16 = arith.constant 0.000000e+00 : f32
    %29 = vector.broadcast %cst_16 : f32 to vector<1x256xf32>
    %30 = arith.select %28, %26, %29 : vector<1x256xi1>, vector<1x256xf32>
    %31 = vector.broadcast %9 : f32 to vector<1x256xf32>
    %32 = arith.cmpf ogt, %8, %31 : vector<1x256xf32>
    %cst_17 = arith.constant 1.000000e+01 : f32
    %cst_18 = arith.constant 1.000000e+00 : f32
    %33 = vector.broadcast %cst_17 : f32 to vector<1x256xf32>
    %34 = vector.broadcast %cst_18 : f32 to vector<1x256xf32>
    %35 = arith.select %32, %33, %34 : vector<1x256xi1>, vector<1x256xf32>
    %c0_19 = arith.constant 0 : index
    %c0_20 = arith.constant 0 : index
    %36 = vector.load %arg8[%c0_19, %c0_20] : memref<1x256xf32, #tpu.memory_space<vmem>>, vector<1x256xf32>
    %37 = arith.mulf %30, %35 : vector<1x256xf32>
    %38 = arith.addf %36, %37 : vector<1x256xf32>
    %c0_21 = arith.constant 0 : index
    %c0_22 = arith.constant 0 : index
    %39 = vector.load %arg8[%c0_21, %c0_22] : memref<1x256xf32, #tpu.memory_space<vmem>>, vector<1x256xf32>
    tpu.vector_store %arg8[%c0_21, %c0_22], %38 {strides = array<i32>} : memref<1x256xf32, #tpu.memory_space<vmem>>, vector<1x256xf32>,
    %c0_i32_23 = arith.constant 0 : i32
    %40 = arith.cmpi eq, %arg2, %c0_i32_23 : i32
    %41 = arith.extui %40 : i1 to i32
    %c0_i32_24 = arith.constant 0 : i32
    %42 = arith.cmpi ne, %41, %c0_i32_24 : i32
    scf.if %42 {
      %c0_25 = arith.constant 0 : index
      %c0_26 = arith.constant 0 : index
      %43 = vector.load %arg8[%c0_25, %c0_26] : memref<1x256xf32, #tpu.memory_space<vmem>>, vector<1x256xf32>
      %44 = vector.shape_cast %43 : vector<1x256xf32> to vector<1x1x256xf32>
      %cst_27 = arith.constant dense<0.000000e+00> : vector<1xf32>
      %45 = vector.multi_reduction <add>, %44, %cst_27 [1, 2] : vector<1x1x256xf32> to vector<1xf32>
      %46 = vector.shape_cast %45 : vector<1xf32> to vector<1x1x1xf32>
      %47 = vector.extract %46[0, 0, 0] : f32 from vector<1x1x1xf32>
      %48 = vector.broadcast %47 : f32 to vector<1x1x128xf32>
      %c0_28 = arith.constant 0 : index
      %c0_29 = arith.constant 0 : index
      %c0_30 = arith.constant 0 : index
      %49 = vector.load %arg7[%c0_28, %c0_29, %c0_30] : memref<1x1x128xf32, #tpu.memory_space<vmem>>, vector<1x1x128xf32>
      tpu.vector_store %arg7[%c0_28, %c0_29, %c0_30], %48 {strides = array<i32>} : memref<1x1x128xf32, #tpu.memory_space<vmem>>, vector<1x1x128xf32>,
    } else {
    }
    return
  }
  func.func @transform_0(%arg0: i32, %arg1: i32, %arg2: i32) -> (i32, i32, i32) {
    %c1_i32 = arith.constant 1 : i32
    %0 = arith.muli %arg0, %c1_i32 : i32
    %1 = arith.addi %0, %arg2 : i32
    %c0_i32 = arith.constant 0 : i32
    %c0_i32_0 = arith.constant 0 : i32
    return %arg1, %c0_i32, %1 : i32, i32, i32
  }
  func.func @transform_1(%arg0: i32, %arg1: i32, %arg2: i32) -> (i32, i32, i32) {
    %c1_i32 = arith.constant 1 : i32
    %0 = arith.muli %arg0, %c1_i32 : i32
    %1 = arith.addi %0, %arg2 : i32
    %c0_i32 = arith.constant 0 : i32
    %c0_i32_0 = arith.constant 0 : i32
    return %arg1, %c0_i32, %1 : i32, i32, i32
  }
  func.func @transform_2(%arg0: i32, %arg1: i32, %arg2: i32) -> (i32, i32, i32) {
    %c1_i32 = arith.constant 1 : i32
    %0 = arith.muli %arg0, %c1_i32 : i32
    %1 = arith.addi %0, %arg2 : i32
    %c0_i32 = arith.constant 0 : i32
    %c0_i32_0 = arith.constant 0 : i32
    return %arg1, %c0_i32, %1 : i32, i32, i32
  }
  func.func @transform_3(%arg0: i32, %arg1: i32, %arg2: i32) -> (i32, i32) {
    %c0_i32 = arith.constant 0 : i32
    %c0_i32_0 = arith.constant 0 : i32
    %c0_i32_1 = arith.constant 0 : i32
    return %c0_i32, %c0_i32_0 : i32, i32
  }
  func.func @transform_4(%arg0: i32, %arg1: i32, %arg2: i32) -> (i32, i32, i32) {
    %c1_i32 = arith.constant 1 : i32
    %0 = arith.muli %arg1, %c1_i32 : i32
    %1 = arith.addi %0, %arg0 : i32
    %c0_i32 = arith.constant 0 : i32
    %c0_i32_0 = arith.constant 0 : i32
    %c0_i32_1 = arith.constant 0 : i32
    return %1, %c0_i32, %c0_i32_0 : i32, i32, i32
  }
}

</mosaic_0001>

<bundles_post_ra>
// kernel: tpu_custom_call.1
= control target key start
LH: loop header
LB: loop body
LE: loop exit
PB: predicated region body
PF: predicated region fallthrough
CT: control target
= control target key end

     0   :  { %s2084_s0 = inlined_call_operand.hbm [shape: f32[2,4,256], index: 0, kind: input, shape index: {}]   ;;  %s2085_s1 = inlined_call_operand.hbm [shape: s32[2,1,256], index: 1, kind: input, shape index: {}]   ;;  %s2086_s2 = inlined_call_operand.vmem [shape: f32[2,1,256], index: 2, kind: input, shape index: {}]   ;;  %s2087_s3 = inlined_call_operand.<no memory space> [shape: f32[1,1], index: 3, kind: input, shape index: {}]   ;;  %s2088_s4 = inlined_call_operand.hbm [shape: f32[2,1,128], index: 4, kind: output, shape index: {}]  }
   0x1   :  { %9 = sst [smem:[#allocation3]] %s2087_s3 }
   0x2   :  { %10 = vsyncpa [#allocation5], 0 }
   0x3   :  { %12 = vsyncpa [#allocation5 + $0x1], 0 }
   0x4   :  { %13 = vsyncpa [#allocation8], 0 }
   0x5   :  { %15 = vsyncpa [#allocation8 + $0x1], 0 }
   0x6   :  { %16 = vsyncpa [#allocation6], 0 }
   0x7   :  { %18 = vsyncpa [#allocation6 + $0x1], 0  ;;  %s1819_s17 = smov 0   ;;  %s1821_s18 = smov 0  }
   0x8   :  { %s1823_s19 = smov 0   ;;  %s1825_s20 = smov 0  }
   0x9   :  { %s1827_s21 = smov 0   ;;  %s1829_s22 = smov 0  }
   0xa LB: > { %s1537_s3 = sadd.s32 4294967295, %s1782_s22   ;;  %s1538_s23 = sadd.s32 4294967294, %s1782_s22   ;;  %s1782_s22 = sphi %s1829_s22, %s24_s22   ;;  %s1778_s21 = sphi %s1827_s21, %s2102_s21   ;;  %s1774_s20 = sphi %s1825_s20, %s2101_s20   ;;  %s1770_s19 = sphi %s1823_s19, %s2100_s19   ;;  %s1766_s18 = sphi %s1821_s18, %s2099_s18   ;;  %s1762_s17 = sphi %s1819_s17, %s2098_s17  }
   0xb   : > { %s39_s24 = sadd.s32 1, %s1778_s21  ;;  %s54_s25 = sadd.s32 1, %s1770_s19 }
   0xc   : > { %p41_p0 = scmp.ge.s32.totalorder %s39_s24, 2  ;;  %p61_p1 = scmp.ne.s32.totalorder %s1770_s19, %s1766_s18 }
   0xd   : > { %p62_p2 = scmp.eq.s32.totalorder %s1782_s22, 0  ;;  %p67_p3 = scmp.ne.s32.totalorder %s1766_s18, %s1762_s17 }
   0xe   : > { %s2104_s24 = smov (%p41_p0, %s39_s24), 0  ;;  %p68_p5 = scmp.eq.s32.totalorder %s1537_s3, 0 }
   0xf   : > { %p1860_p4 = por %p62_p2, %p61_p1  ;;  %s49_s27 = ssub.s32 %s1778_s21, %s2104_s24 }
  0x10   : > { %p174_p6 = scmp.eq.s32.totalorder %s1537_s3, 1  ;;  %p52_p7 = scmp.eq.s32.totalorder %s49_s27, 0 }
  0x11   : > { %p1866_p8 = por %p68_p5, %p67_p3  ;;  %p180_p10 = scmp.eq.s32.totalorder %s1538_s23, 1 }
  0x12   : > { %p1870_p9 = por %p174_p6, %p61_p1  ;;  %p1581_p13 = scmp.lt.s32.totalorder %s1782_s22, 2 }
  0x13   : > { %s1875_s30 = scalar_select %p52_p7, %s1770_s19, %s54_s25  }
  0x14   : > { %p1877_p11 = por %p180_p10, %p67_p3  ;;  %s1884_s6 = sand.u32 1, %s1770_s19  }
  0x15   : > { %s1541_s7 = sshll.u32 %s1884_s6, 3  ;;  %s1560_s8 = sshll.u32 %s1778_s21, 7 }
  0x16   : > { %s216_s11 = scalar_lea.hbm %s2084_s0, %s1560_s8  ;;  %s207_s12 = scalar_lea.vmem [#allocation4], %s1541_s7 }
  0x17   : > { %s218_s13 = sshll.u32 %s207_s12, 4  ;;  %p1893_p0 = pnand %p1581_p13, %p1860_p4  ;;  %s219_s13 = int_to_ptr.vmem [resolvable:$true] %s218_s13 }
  0x18   : > { %p1547_p1 = scmp.ge.s32.totalorder %s1782_s22, 1  ;;  %p259_p2 = scmp.lt.s32.totalorder %s1782_s22, 3 }
  0x19   : > { %s204_s15 = scalar_lea.sflag [#allocation5], %s1884_s6  ;;  %p1644_p3 = pneg %p1893_p0 }
  0x1a   : > { %s1655_s16 = scalar_lea.vmem %s219_s13, 128  ;;  %s1784_s3 = smov [#allocation4]  }
  0x1b   : > { %p1656_p5 = scmp.ne.s32.totalorder %s219_s13, %s1655_s16  ;;  %s1660_s23 = sshll.u32 %s1784_s3, 4  ;;  %s1661_s23 = int_to_ptr.vmem [resolvable:$false] %s1660_s23 }
  0x1c   : > { %s1662_s25 = scalar_lea.vmem %s1661_s23, 256  ;;  %p1663_p4 = scmp.lt.s32.totalorder %s219_s13, %s1661_s23 }
  0x1d   : > { %p1658_p6 = pnand %p1656_p5, %p1644_p3  ;;  %p1664_p10 = scmp.lt.s32.totalorder %s1662_s25, %s1655_s16 }
  0x1f   : > { %p1659_p7 = pneg %p1658_p6  ;;  %p1665_p13 = por %p1664_p10, %p1663_p4 }
  0x21   : > { %p1666_p12 = pnand %p1665_p13, %p1659_p7 }
  0x23   : > { %1669 = shalt.err (!%p1666_p12)
}
  0x24   : > { %1573 = dma.hbm_to_vmem [thread:$0]  (!%p1893_p0), %s216_s11, 128, %s219_s13, %s204_s15  }
  0x25   : > { %p1911_p5 = pnand %p1547_p1, %p259_p2  ;;  %s1544_s27 = sshll.u32 %s1884_s6, 1 }
  0x26   : > { %s1561_s7 = sshll.u32 %s1778_s21, 5  ;;  %s229_s12 = scalar_lea.vmem [#allocation7], %s1544_s27 }
  0x27   : > { %s238_s10 = scalar_lea.hbm %s2085_s1, %s1561_s7  ;;  %s240_s16 = sshll.u32 %s229_s12, 4  ;;  %s241_s16 = int_to_ptr.vmem [resolvable:$true] %s240_s16 }
  0x28   : > { %s226_s3 = scalar_lea.sflag [#allocation8], %s1884_s6  ;;  %s1683_s23 = scalar_lea.vmem %s241_s16, 32 }
  0x29   : > { %p1684_p12 = scmp.ne.s32.totalorder %s241_s16, %s1683_s23  ;;  %s1785_s11 = smov [#allocation7]  }
  0x2a   : > { %s1688_s13 = sshll.u32 %s1785_s11, 4  ;;  %s1689_s13 = int_to_ptr.vmem [resolvable:$false] %s1688_s13 }
  0x2b   : > { %p1686_p6 = pnand %p1684_p12, %p1644_p3  ;;  %s1690_s15 = scalar_lea.vmem %s1689_s13, 64 }
  0x2c   : > { %p1691_p1 = scmp.lt.s32.totalorder %s241_s16, %s1689_s13  ;;  %p1692_p2 = scmp.lt.s32.totalorder %s1690_s15, %s1683_s23 }
  0x2d   : > { %p1687_p7 = pneg %p1686_p6 }
  0x2e   : > { %p1693_p4 = por %p1692_p2, %p1691_p1 }
  0x30   : > { %p1694_p10 = pnand %p1693_p4, %p1687_p7 }
  0x32   : > { %1697 = shalt.err (!%p1694_p10)
}
  0x33   : > { %1576 = dma.hbm_to_vmem [thread:$0]  (!%p1893_p0), %s238_s10, 32, %s241_s16, %s226_s3  }
  0x34   : > { %263 = sbr.rel (%p1911_p5) target bundleno = 575 (0x23f), region = 36  ;;  %s1929_s6 = sand.u32 (!%p1911_p5), 1, %s1766_s18  }
  0x35   : > { %s1548_s25 = sshll.u32 (!%p1911_p5), %s1929_s6, 3  ;;  %s266_s27 = scalar_lea.sflag (!%p1911_p5), [#allocation5], %s1929_s6 }
  0x36   : > { %s269_s7 = scalar_lea.vmem (!%p1911_p5), [#allocation4], %s1548_s25 }
  0x39   : > { %1749 = dma.done.wait (%p1866_p8), %s266_s27, 128  }
  0x3a   : > { %1751 = vsyncadd (%p1866_p8), %s266_s27, 4294967168  ;;  %s1549_s14 = sshll.u32 %s1929_s6, 1  ;;  %s275_s26 = scalar_lea.sflag [#allocation8], %s1929_s6 }
  0x3b   : > { %s1939_s8 = scalar_lea.vmem [#allocation7], %s1549_s14 }
  0x3c   : > { %1753 = dma.done.wait (%p1866_p8), %s275_s26, 32  }
  0x3d   : > { %1755 = vsyncadd (%p1866_p8), %s275_s26, 4294967264  ;;  %v336_v0 = vlaneseq  ;;  %v1786_v1 = vmov 0.0   ;;  %vm348_vm1 = vcmask 1043456   ;;  %v341_v3 = vld [vmem:[%s269_s7] sm:$0xff]  ;;  %vm372_vm2 = vcmask 31744   ;;  %p322_p8 = scmp.lt.s32.totalorder %s1774_s20, 1 }
  0x3e   : > { %446 = vmatprep.mubr.f32.mxu0 %v1786_v1  ;;  %532 = vmatprep.mubr.f32.mxu1 %v1786_v1  ;;  %v346_v4 = vcombine.high %v341_v3, %v341_v3  ;;  %v349_v5 = vsel %vm348_vm1, %v341_v3, -inf  ;;  %v1966_v24 = vld [vmem:[%s1939_s8] sm:$0x3]  ;;  %v1787_v26 = vmov 0   ;;  %v1788_v59 = vmov 1.0   ;;  %s344_s9 = sld [smem:[#allocation3]] }
  0x3f   : > { %vm1947_vm0 = vcmp.lt.s32.totalorder %v336_v0, 256  ;;  %v350_v6 = vrot.slane %v349_v5, 4  ;;  %v1962_v20 = vshrl.u32 %v336_v0, 7  ;;  %v374_v27 = vsel %vm372_vm2, 1.0, %v1787_v26  ;;  %s323_s28 = scalar_select %p322_p8, %s1774_s20, 1 }
  0x40   : > { %340 = vst.msk [vmem:[#allocation2] sm:$0x3] %vm1947_vm0, %v1786_v1  ;;  %v356_v7 = vsel %vm348_vm1, %v346_v4, -inf  ;;  %v1973_v29 = vsub.f32 %v374_v27, %v374_v27  ;;  %vm1338_vm6 = vcmp.ne.s32.totalorder %v1966_v24, 255  ;;  %vm1384_vm7 = vcmask 1040384   ;;  %s315_s23 = scalar_lea.vmem [#allocation9], %s1929_s6 }
  0x41   : > { %v351_v8 = vmax.f32 %v349_v5, %v350_v6  ;;  %v357_v9 = vrot.slane %v356_v7, 4  ;;  %v859_v23 = vsub.s32 1, %v1962_v20  ;;  %v855_v25 = vsub.s32 0, %v1962_v20  ;;  %s1550_s10 = sshll.u32 %s323_s28, 1  ;;  %s1413_s11 = sshll.u32 %s315_s23, 4  ;;  %s2039_s11 = int_to_ptr.vmem [resolvable:$true] %s1413_s11 }
  0x42   : > { %v1980_v31 = vand.u32 4294901760, %v1973_v29  ;;  %s328_s3 = scalar_lea.vmem %s2086_s2, %s1550_s10  ;;  %s1557_s13 = sshll.u32 %s1774_s20, 4 }
  0x43   : > { %v352_v10 = vrot.slane %v351_v8, 2  ;;  %v358_v11 = vmax.f32 %v356_v7, %v357_v9  ;;  %v860_v28 = vrot.slane %v1966_v24, %v859_v23  ;;  %v856_v30 = vrot.slane %v1966_v24, %v855_v25  ;;  %s1411_s7 = scalar_lea.hbm %s2088_s4, %s1557_s13  ;;  %s1400_s14 = scalar_lea.sflag [#allocation6], %s1929_s6 }
  0x44   : > { %v450_v36 = vsub.f32 %v1973_v29, %v1980_v31  ;;  %s1698_s26 = scalar_lea.vmem %s2039_s11, 16  ;;  %s1790_s8 = smov [#allocation9]  }
  0x45   : > { %v353_v12 = vmax.f32 %v351_v8, %v352_v10  ;;  %v359_v13 = vrot.slane %v358_v11, 2  ;;  %vm862_vm3 = vcmp.eq.s32.totalorder %v1962_v20, %v860_v28  ;;  %vm861_vm4 = vcmp.eq.s32.totalorder %v1962_v20, %v856_v30  ;;  %p1699_p0 = scmp.ne.s32.totalorder %s2039_s11, %s1698_s26  ;;  %s1702_s20 = sshll.u32 %s1790_s8, 4  ;;  %s1703_s20 = int_to_ptr.vmem [resolvable:$false] %s1702_s20 }
  0x46   : > { %v864_v32 = vsel %vm862_vm3, %v346_v4, 0.0  ;;  %v863_v34 = vsel %vm861_vm4, %v341_v3, 0.0  ;;  %v451_v44 = vand.u32 4294901760, %v450_v36  ;;  %s1704_s28 = scalar_lea.vmem %s1703_s20, 32  ;;  %p1705_p5 = scmp.lt.s32.totalorder %s2039_s11, %s1703_s20 }
  0x47   : > { %v354_v14 = vrot.slane %v353_v12, 1  ;;  %v360_v15 = vmax.f32 %v358_v11, %v359_v13  ;;  %v869_v33 = vsel %vm348_vm1, %v864_v32, 0  ;;  %v866_v41 = vsel %vm348_vm1, %v863_v34, 0  ;;  %p1700_p3 = pnand %p1699_p0, %p1870_p9  ;;  %p1706_p12 = scmp.lt.s32.totalorder %s1704_s28, %s1698_s26 }
  0x48   : > { %v1987_v40 = vand.u32 4294901760, %v869_v33  ;;  %v903_v46 = vand.u32 4294901760, %v866_v41 }
  0x49   : > { %v1956_v16 = vmax.f32 %v353_v12, %v354_v14  ;;  %v361_v17 = vrot.slane %v360_v15, 1  ;;  %p1701_p13 = pneg %p1700_p3  ;;  %p1707_p6 = por %p1706_p12, %p1705_p5 }
  0x4a   : > { %v980_v49 = vsub.f32 %v869_v33, %v1987_v40  ;;  %v986_v52 = vsub.f32 %v866_v41, %v903_v46 }
  0x4b   : > { %v1958_v18 = vmax.f32 %v360_v15, %v361_v17  ;;  %p1708_p7 = pnand %p1707_p6, %p1701_p13 }
  0x4c   : > { %v981_v54 = vand.u32 4294901760, %v980_v49  ;;  %v987_v57 = vand.u32 4294901760, %v986_v52 }
  0x4d   : > { %v365_v19 = vcombine.low %v1956_v16, %v1958_v18 }
  0x4e   : > { %v982_v58 = vsub.f32 %v980_v49, %v981_v54  ;;  %v988_v60 = vsub.f32 %v986_v52, %v987_v57 }
  0x4f   : > { %v367_v21 = vsub.f32 %v341_v3, %v365_v19 }
  0x50   : > { %v983_v61 = vand.u32 4294901760, %v982_v58  ;;  %v989_v62 = vand.u32 4294901760, %v988_v60 }
  0x51   : > { %v368_v22 = vmul.f32 1.442695, %v367_v21 }
  0x53   : > { %1636 = vpow2.f32 %v368_v22 }
  0x60   : > { %v1637_v35 = vpop.eup %1636 }
  0x61   : > { %v371_v37 = vcombine.high %v1637_v35, %v1637_v35  ;;  %v376_v38 = vsel %vm348_vm1, %v1637_v35, 0 }
  0x62   : > { %v412_v39 = vand.u32 4294901760, %v376_v38 }
  0x63   : > { %v378_v42 = vsel %vm348_vm1, %v371_v37, 0 }
  0x64   : > { %v410_v43 = vand.u32 4294901760, %v378_v42  ;;  %v495_v45 = vsub.f32 %v376_v38, %v412_v39 }
  0x66   : > { %411 = vmatprep.subr.mxu0 %v410_v43  ;;  %v489_v47 = vsub.f32 %v378_v42, %v410_v43  ;;  %v496_v48 = vand.u32 4294901760, %v495_v45 }
  0x67   : > { %413 = vmatpush1.msra.mxu0 %v412_v39 }
  0x68   : > { %452 = vmatmul.mubr.f32.vlgmr.msra.gmra.mxu0 %v451_v44  ;;  %v490_v50 = vand.u32 4294901760, %v489_v47  ;;  %572 = vmatprep.subr.mxu0 %v489_v47  ;;  %v497_v51 = vsub.f32 %v495_v45, %v496_v48 }
  0x69   : > { %575 = vmatpush1.msra.mxu0 %v495_v45  ;;  %608 = vmatprep.mubr.f32.mxu0 %v1786_v1  ;;  %v1789_v45 = vmov 1966171168  }
  0x6a   : > { %v491_v53 = vsub.f32 %v489_v47, %v490_v50  ;;  %726 = vmatprep.subr.mxu0 %v490_v50  ;;  %v498_v55 = vand.u32 4294901760, %v497_v51 }
  0x6c   : > { %v492_v56 = vand.u32 4294901760, %v491_v53  ;;  %611 = vmatmul.mubr.f32.vlgmr.msra.gmra.mxu0 %v1973_v29 }
  0x6d   : > { %730 = vmatpush1.msra.mxu0 %v496_v48  ;;  %763 = vmatprep.mubr.f32.mxu0 %v1786_v1 }
  0x6e   : > { %493 = vmatprep.subr.mxu1 %v492_v56  ;;  %902 = vmatprep.subr.mxu0 %v1987_v40 }
  0x6f   : > { %499 = vmatpush1.msra.mxu1 %v498_v55 }
  0x70   : > { %1551 = vmatmul.mubr.msk.f32.vlgmr.msra.gmra.mxu1 %vm372_vm2, %v1788_v59  ;;  %648 = vmatprep.subr.mxu1 %v410_v43 }
  0x71   : > { %650 = vmatpush1.msra.mxu1 %v412_v39  ;;  %683 = vmatprep.mubr.f32.mxu1 %v1786_v1 }
  0x72   : > { %802 = vmatprep.subr.mxu1 %v410_v43  ;;  %1552 = vmatmul.mubr.msk.f32.vlgmr.msra.gmra.mxu0 %vm372_vm2, %v1788_v59 }
  0x73   : > { %904 = vmatpush1.msra.mxu0 %v903_v46  ;;  %937 = vmatprep.mubr.f32.mxu0 %v1786_v1 }
  0x74   : > { %687 = vmatmul.mubr.f32.vlgmr.msra.gmra.mxu1 %v1980_v31  ;;  %1063 = vmatprep.subr.mxu0 %v980_v49 }
  0x75   : > { %804 = vmatpush1.msra.mxu1 %v412_v39  ;;  %837 = vmatprep.mubr.f32.mxu1 %v1786_v1 }
  0x76   : > { %943 = vmatmul.mubr.f32.vlgmr.msra.gmra.mxu0 %v451_v44  ;;  %984 = vmatprep.subr.mxu1 %v983_v61  ;;  %v343_v61 = vld [vmem:[%s328_s3] sm:$0x3] }
  0x77   : > { %1066 = vmatpush1.msra.mxu0 %v986_v52  ;;  %1099 = vmatprep.mubr.f32.mxu0 %v1786_v1 }
  0x78   : > { %1553 = vmatmul.mubr.msk.f32.vlgmr.msra.gmra.mxu1 %vm372_vm2, %v1788_v59  ;;  %1217 = vmatprep.subr.mxu0 %v981_v54 }
  0x79   : > { %990 = vmatpush1.msra.mxu1 %v989_v62  ;;  %1023 = vmatprep.mubr.f32.mxu1 %v1786_v1 }
  0x7a   : > { %1102 = vmatmul.mubr.f32.vlgmr.msra.gmra.mxu0 %v1973_v29  ;;  %1139 = vmatprep.subr.mxu1 %v1987_v40 }
  0x7b   : > { %1221 = vmatpush1.msra.mxu0 %v987_v57  ;;  %1254 = vmatprep.mubr.f32.mxu0 %v1786_v1 }
  0x7c   : > { %1554 = vmatmul.mubr.msk.f32.vlgmr.msra.gmra.mxu1 %vm372_vm2, %v1788_v59 }
  0x7d   : > { %1141 = vmatpush1.msra.mxu1 %v903_v46  ;;  %1174 = vmatprep.mubr.f32.mxu1 %v1786_v1 }
  0x7e   : > { %1555 = vmatmul.mubr.msk.f32.vlgmr.msra.gmra.mxu0 %vm372_vm2, %v1788_v59  ;;  %1293 = vmatprep.subr.mxu1 %v1987_v40 }
  0x80   : > { %1178 = vmatmul.mubr.f32.vlgmr.msra.gmra.mxu1 %v1980_v31 }
  0x81   : > { %1295 = vmatpush1.msra.mxu1 %v903_v46  ;;  %1328 = vmatprep.mubr.f32.mxu1 %v1786_v1  ;;  %v1343_v46 = vunpack.c.l.s4 %v1789_v45 }
  0x83   : > { %v1344_v55 = vunpack.c.0.s8 %v1343_v46 }
  0x84   : > { %1556 = vmatmul.mubr.msk.f32.vlgmr.msra.gmra.mxu1 %vm372_vm2, %v1788_v59 }
 0x128   : > { %v453_v63 = vpop.f32.mrf.mxu0 }
 0x12a   : > { %v455_v0 = vpop.f32.mrf.mxu0 }
 0x12c   : > { %v612_v3 = vpop.f32.mrf.mxu0 }
 0x12e   : > { %v614_v4 = vpop.f32.mrf.mxu0 }
 0x130   : > { %v535_v5 = vpop.f32.mrf.mxu1 }
 0x131   : > { %v536_v6 = vadd.f32 %v535_v5, %v453_v63  ;;  %v1347_v63 = vsub.s32 %v1344_v55, %v1962_v20 }
 0x132   : > { %v537_v7 = vpop.f32.mrf.mxu1  ;;  %v766_v8 = vpop.f32.mrf.mxu0 }
 0x133   : > { %v613_v9 = vadd.f32 %v612_v3, %v536_v6  ;;  %v538_v10 = vadd.f32 %v537_v7, %v455_v0  ;;  %v1358_v0 = vstv %s344_s9  ;;  %v1361_v7 = vld [vmem:[#allocation2] sm:$0x3] }
 0x134   : > { %v688_v11 = vpop.f32.mrf.mxu1  ;;  %v768_v12 = vpop.f32.mrf.mxu0  ;;  %vm1359_vm5 = vcmp.gt.f32.partialorder %v343_v61, %v1358_v0 }
 0x135   : > { %v615_v13 = vadd.f32 %v614_v4, %v538_v10  ;;  %v689_v14 = vadd.f32 %v688_v11, %v613_v9  ;;  %v1360_v5 = vsel %vm1359_vm5, 10.0, %v1788_v59 }
 0x136   : > { %v690_v15 = vpop.f32.mrf.mxu1  ;;  %v944_v17 = vpop.f32.mrf.mxu0 }
 0x137   : > { %v767_v1 = vadd.f32 %v766_v8, %v689_v14  ;;  %v691_v19 = vadd.f32 %v690_v15, %v615_v13 }
 0x138   : > { %v840_v21 = vpop.f32.mrf.mxu1  ;;  %v946_v22 = vpop.f32.mrf.mxu0 }
 0x139   : > { %v769_v26 = vadd.f32 %v768_v12, %v691_v19  ;;  %v841_v27 = vadd.f32 %v840_v21, %v767_v1 }
 0x13a   : > { %v842_v28 = vpop.f32.mrf.mxu1  ;;  %v1103_v29 = vpop.f32.mrf.mxu0 }
 0x13b   : > { %1638 = vlog2.f32 %v841_v27  ;;  %v843_v30 = vadd.f32 %v842_v28, %v769_v26 }
 0x13c   : > { %v1026_v31 = vpop.f32.mrf.mxu1  ;;  %v1105_v34 = vpop.f32.mrf.mxu0 }
 0x13d   : > { %1640 = vlog2.f32 %v843_v30  ;;  %v1027_v32 = vadd.f32 %v1026_v31, %v944_v17 }
 0x13e   : > { %v1028_v33 = vpop.f32.mrf.mxu1  ;;  %v1257_v40 = vpop.f32.mrf.mxu0 }
 0x13f   : > { %v1029_v35 = vadd.f32 %v1028_v33, %v946_v22  ;;  %v1104_v37 = vadd.f32 %v1103_v29, %v1027_v32 }
 0x140   : > { %v1179_v36 = vpop.f32.mrf.mxu1  ;;  %v1259_v43 = vpop.f32.mrf.mxu0 }
 0x141   : > { %v1106_v38 = vadd.f32 %v1105_v34, %v1029_v35  ;;  %v1180_v41 = vadd.f32 %v1179_v36, %v1104_v37 }
 0x142   : > { %v1181_v39 = vpop.f32.mrf.mxu1 }
 0x143   : > { %v1182_v42 = vadd.f32 %v1181_v39, %v1106_v38  ;;  %v1258_v49 = vadd.f32 %v1257_v40, %v1180_v41 }
 0x144   : > { %v1331_v44 = vpop.f32.mrf.mxu1 }
 0x145   : > { %v1260_v50 = vadd.f32 %v1259_v43, %v1182_v42  ;;  %v1332_v56 = vadd.f32 %v1331_v44, %v1258_v49 }
 0x146   : > { %v1333_v52 = vpop.f32.mrf.mxu1 }
 0x147   : > { %v1334_v58 = vadd.f32 %v1333_v52, %v1260_v50 }
 0x148   : > { %v1639_v47 = vpop.eup %1638 }
 0x149   : > { %v846_v48 = vmul.f32 0.6931472, %v1639_v47 }
 0x14a   : > { %v1641_v51 = vpop.eup %1640 }
 0x14b   : > { %v848_v53 = vmul.f32 0.6931472, %v1641_v51  ;;  %v849_v54 = vadd.f32 %v846_v48, %v1956_v16 }
 0x14d   : > { %v850_v57 = vadd.f32 %v848_v53, %v1958_v18  ;;  %v1336_v60 = vsub.f32 %v849_v54, %v1332_v56 }
 0x14f   : > { %v1337_v62 = vsub.f32 %v850_v57, %v1334_v58 }
 0x151   : > { %v1341_v3 = vcombine.low %v1336_v60, %v1337_v62 }
 0x153   : > { %v1348_v4 = vrot.slane %v1341_v3, %v1347_v63 }
 0x155   : > { %v1355_v16 = vrot.slane %v1348_v4, %v1347_v63 }
 0x157   : > { %v1357_v6 = vsel %vm1338_vm6, %v1355_v16, 0.0 }
 0x158   : > { %v1362_v8 = vmul.f32 %v1360_v5, %v1357_v6 }
 0x15a   : > { %v1363_v9 = vadd.f32 %v1362_v8, %v1361_v7 }
 0x15c   : > { %1368 = vst.msk [vmem:[#allocation2] sm:$0x3] %vm1947_vm0, %v1363_v9 }
 0x163   : > { %v1372_v18 = vld [vmem:[#allocation2] sm:$0x3] }
 0x164   : > { %v1377_v10 = vrot.slane %v1372_v18, %v855_v25  ;;  %v1381_v24 = vrot.slane %v1372_v18, %v859_v23 }
 0x166   : > { %v1385_v11 = vsel %vm1384_vm7, %v1377_v10, 0.0  ;;  %v1386_v12 = vsel %vm1384_vm7, %v1381_v24, 0.0 }
 0x167   : > { %v1387_v59 = vadd.f32 %v1386_v12, %v1385_v11 }
 0x169   : > { %1388 = vadd.xlane.f32.xlu0 %v1387_v59 }
 0x1f2   : > { %v1389_v13 = vpop.xlane.xlu0 %1388 }
 0x1f3   : > { %v1390_v14 = vrot.slane %v1389_v13, 4 }
 0x1f5   : > { %v1391_v15 = vadd.f32 %v1390_v14, %v1389_v13 }
 0x1f7   : > { %v1392_v2 = vrot.slane %v1391_v15, 2 }
 0x1f9   : > { %v1393_v17 = vadd.f32 %v1392_v2, %v1391_v15 }
 0x1fb   : > { %v1394_v1 = vrot.slane %v1393_v17, 1 }
 0x1fd   : > { %v1395_v19 = vadd.f32 %v1394_v1, %v1393_v17 }
 0x1ff   : > { %1562 = vpush %v1395_v19 }
 0x230   : > { %s1563_s15 = spop %1562 }
 0x231   : > { %v1397_v20 = vstv %s1563_s15 }
 0x232   : > { %1398 = vst [vmem:[%s315_s23] sm:$0x1] %v1397_v20 }
 0x233   : > { %1711 = shalt.err (!%p1708_p7)
}
 0x234   : > { %s1712_s9 = scalar_lea.hbm %s1411_s7, 16  ;;  %s1716_s12 = scalar_lea.hbm %s2088_s4, 32 }
 0x235   : > { %p1713_p1 = scmp.ne.s32.totalorder %s1411_s7, %s1712_s9  ;;  %p1717_p10 = scmp.lt.s32.totalorder %s1411_s7, %s2088_s4 }
 0x236   : > { %p1718_p8 = scmp.lt.s32.totalorder %s1716_s12, %s1712_s9 }
 0x237   : > { %p1714_p2 = pnand %p1713_p1, %p1870_p9 }
 0x238   : > { %p1719_p0 = por %p1718_p8, %p1717_p10 }
 0x239   : > { %p1715_p4 = pneg %p1714_p2 }
 0x23b   : > { %p1720_p3 = pnand %p1719_p0, %p1715_p4 }
 0x23d   : > { %1723 = shalt.err (!%p1720_p3)
}
 0x23e   : > { %1568 = dma.vmem_to_hbm [thread:$0]  (%p1870_p9), %s2039_s11, 16, %s1411_s7, %s1400_s14  }
 0x23f PF: > { %s1425_s23 = sand.u32 1, %s1762_s17   ;;  %p2097_p13 = scmp.ge.s32.totalorder %s1782_s22, 2 }
 0x240   : > { %s1426_s13 = scalar_lea.sflag [#allocation6], %s1425_s23 }
 0x241   : > { %p1578_p5 = pnand %p2097_p13, %p1877_p11 }
 0x243   : > { %p1579_p12 = pneg %p1578_p5 }
 0x245   : > { %1757 = dma.done.wait (%p1579_p12), %s1426_s13, 16  }
 0x246   : > { %1759 = vsyncadd (%p1579_p12), %s1426_s13, 4294967280  ;;  %s24_s22 = sadd.s32 1, %s1782_s22   ;;  %s2098_s17 = smov %s1766_s18 }
 0x247   : > { %p21_p6 = scmp.ge.s32.totalorder %s24_s22, 4   ;;  %s2099_s18 = smov %s1770_s19 }
 0x248   : > { %s2100_s19 = smov %s1875_s30  ;;  %s2101_s20 = smov %s1778_s21 }
 0x249   : > { %s2102_s21 = smov %s2104_s24  ;;  %23 = sbr.rel (!%p21_p6) target bundleno = 10 (0xa), region = 105 }
 0x24e   :  { %1430 = vsyncpa [#allocation5], 1 }
 0x24f   :  { %1432 = vsyncpa [#allocation5 + $0x1], 1 }
 0x250   :  { %1433 = vsyncpa [#allocation8], 1 }
 0x251   :  { %1435 = vsyncpa [#allocation8 + $0x1], 1 }
 0x252   :  { %1436 = vsyncpa [#allocation6], 1 }
 0x253   :  { %1438 = vsyncpa [#allocation6 + $0x1], 1 }

</bundles_post_ra>
